<compile_context>
chip_gen: v7x
topology: tpu7x:2x2x1
jax: 0.10.0
libtpu: 0.0.40
codegen_flags: <defaults>
</compile_context>

<pallas_src>
import functools

import jax
import jax.numpy as jnp
from jax.experimental import pallas as pl
from jax.experimental.pallas import tpu as pltpu


# ---------------------------------------------------------------------------
# Kernel 1: fused (1, K) conv + bias (+ capsule squash) for one
# (sample, c_out-chunk) grid step, computed on the MXU in a "wide" layout.
#
#   x_ref : [1, C_in, F]        F = H_out * W_pad (flattened padded rows)
#   w_ref : [C_chunk, K*C_in]   columns ordered (tap, in_channel)
#   b_ref : [C_chunk, 1]
#   g_ref : [F_out, F_out]      0/1 capsule-group matrix (only when fused)
#   o_ref : [1, C_chunk, S]     S = H_out * W_out (NCHW-flattened spatial)
#
# Lane t of the wide result is a valid conv output iff (t mod W_pad) lands on
# an output column; the valid lanes are scattered into the compact,
# lane-dense output block at the end.
# ---------------------------------------------------------------------------
def _conv_caps_kernel(x_ref, w_ref, b_ref, *rest, k, h_out, w_pad, w_out,
                      stride, fuse_squash):
    if fuse_squash:
        g_ref, o_ref = rest
    else:
        (o_ref,) = rest

    xf = x_ref[0]                                   # [C_in, F]
    c_in = xf.shape[0]
    f_out = xf.shape[1] - (k - 1)

    # K shifted-window matmuls accumulated in f32 (MXU, not VPU MACs).
    acc = None
    for kk in range(k):
        w_k = w_ref[:, kk * c_in:(kk + 1) * c_in]   # [C_chunk, C_in]
        x_k = xf[:, kk:kk + f_out]                  # [C_in, F_out] lane-shifted
        p = jnp.dot(w_k, x_k, preferred_element_type=jnp.float32)
        acc = p if acc is None else acc + p
    acc = acc + b_ref[...]                          # fused bias (lane broadcast)

    if fuse_squash:
        # Per-capsule sum-of-squares via one 0/1 grouping matmul (MXU).
        # Invalid ("wide-only") lanes get ss == 0 and are never stored.
        ss = jnp.dot(acc * acc, g_ref[...], preferred_element_type=jnp.float32)
        acc = acc * (ss / ((1.0 + ss) * (jnp.sqrt(ss) + 1e-8)))

    # Scatter the W_out valid columns of each padded row into the compact,
    # NCHW-flattened output block (the HBM writeback DMA stays lane-dense).
    for h in range(h_out):
        if stride == 1:
            piece = acc[:, h * w_pad:h * w_pad + w_out]
        else:
            # TODO(synk): strided lane slice for stride > 1 relies on
            # lax.slice lowering; not exercised by the demo config.
            piece = jax.lax.slice(
                acc, (0, h * w_pad),
                (acc.shape[0], h * w_pad + (w_out - 1) * stride + 1),
                (1, stride))
        o_ref[0, :, pl.ds(h * w_out, w_out)] = piece


# ---------------------------------------------------------------------------
# Kernel 2 (fallback only): standalone squash, used when dim_caps does not
# divide H_out*W_out (capsules then straddle channel rows and cannot be fused
# into the per-chunk conv epilogue).
# TODO(synk): this fallback layout is lane-sparse for small dim_caps; the
# fused path is the fast one and is taken whenever dim_caps | H_out*W_out.
# ---------------------------------------------------------------------------
def _squash_kernel(x_ref, o_ref):
    x = x_ref[...]
    ss = jnp.sum(x * x, axis=-1, keepdims=True)
    o_ref[...] = x * (ss / ((1.0 + ss) * (jnp.sqrt(ss) + 1e-8)))


def _squash(caps2d):
    r, d = caps2d.shape
    # Size the tile by bytes (~2 MiB per buffer), not by row count.
    tile = max(8, ((2 << 20) // (4 * d)) // 8 * 8)
    tile = r if tile >= r else tile
    return pl.pallas_call(
        _squash_kernel,
        out_shape=jax.ShapeDtypeStruct((r, d), jnp.float32),
        grid=(pl.cdiv(r, tile),),
        in_specs=[pl.BlockSpec((tile, d), lambda i: (i, 0))],
        out_specs=pl.BlockSpec((tile, d), lambda i: (i, 0)),
        compiler_params=pltpu.CompilerParams(dimension_semantics=("parallel",)),
    )(caps2d)


# ---------------------------------------------------------------------------
# PrimaryCapsule forward
# ---------------------------------------------------------------------------
@functools.partial(jax.jit,
                   static_argnames=("dim_caps", "kernel_size", "stride", "padding"))
def primary_capsule_forward(x, weight, bias, *, dim_caps, kernel_size,
                            stride=1, padding=0):
    """x: [N, C_in, H, W] (NCHW). weight: [C_out, C_in, 1, K]. bias: [C_out]."""
    n, c_in, h, w = x.shape
    c_out = weight.shape[0]
    k = kernel_size

    if padding > 0:
        x = jnp.pad(x, ((0, 0), (0, 0), (padding, padding), (padding, padding)))
        h += 2 * padding
        w += 2 * padding

    h_out = (h - 1) // stride + 1             # conv kernel height is 1
    w_out = (w - k) // stride + 1
    s_out = h_out * w_out
    assert (c_out * s_out) % dim_caps == 0, (
        f"C_out*H_out*W_out={c_out * s_out} must be divisible by {dim_caps}")
    num_caps = c_out * s_out // dim_caps

    # H-stride is a cheap row selection; flattening rows to the "wide" layout
    # [N, C_in, F] is a free (row-major) reshape done by XLA.
    x_rows = (x[:, :, ::stride, :] if stride > 1 else x).astype(jnp.float32)
    f = h_out * w
    f_out = f - (k - 1)
    x_flat = x_rows.reshape(n, c_in, f)

    # Weights resident in VMEM; columns ordered (tap, in_channel) so per-tap
    # slabs are contiguous lane slices inside the kernel.  Bias as a column.
    w2d = jnp.transpose(weight[:, :, 0, :], (0, 2, 1)).reshape(c_out, k * c_in)
    w2d = w2d.astype(jnp.float32)
    b2d = bias.astype(jnp.float32).reshape(c_out, 1)

    # Fused squash needs every capsule to stay inside one output-channel row.
    fuse = (s_out % dim_caps == 0)

    # Conservative VMEM budget (double-buffered blocks + intermediates).
    def _est(cc, fused):
        blocks = c_in * f + cc * k * c_in + cc + cc * s_out
        blocks += f_out * f_out if fused else 0
        interm = c_in * f_out + 8 * cc * f_out
        return 4 * (2 * blocks + interm)

    budget = 10 << 20
    divisors = [d for d in range(c_out, 0, -1)
                if c_out % d == 0 and (d == c_out or d % 8 == 0)]
    if fuse and all(_est(d, True) > budget for d in divisors):
        fuse = False                          # grouping matrix too big: unfuse
    c_chunk = next((d for d in divisors if _est(d, fuse) <= budget), divisors[-1])
    n_chunks = c_out // c_chunk

    in_specs = [
        pl.BlockSpec((1, c_in, f), lambda i, j: (i, 0, 0)),        # x, per sample
        pl.BlockSpec((c_chunk, k * c_in), lambda i, j: (j, 0)),    # weights (VMEM)
        pl.BlockSpec((c_chunk, 1), lambda i, j: (j, 0)),           # bias
    ]
    args = [x_flat, w2d, b2d]

    if fuse:
        # 0/1 capsule-grouping matrix over the wide layout: G[t, t'] = 1 iff
        # both lanes are valid conv outputs and belong to the same capsule.
        t = jnp.arange(f_out)
        col = t % w
        if stride == 1:
            valid = col < w_out
            cidx = col
        else:
            valid = (col % stride == 0) & ((col // stride) < w_out)
            cidx = col // stride
        grp = ((t // w) * w_out + cidx) // dim_caps
        gmat = ((grp[:, None] == grp[None, :])
                & valid[:, None] & valid[None, :]).astype(jnp.float32)
        in_specs.append(pl.BlockSpec((f_out, f_out), lambda i, j: (0, 0)))
        args.append(gmat)

    kernel = functools.partial(_conv_caps_kernel, k=k, h_out=h_out, w_pad=w,
                               w_out=w_out, stride=stride, fuse_squash=fuse)
    conv = pl.pallas_call(
        kernel,
        out_shape=jax.ShapeDtypeStruct((n, c_out, s_out), jnp.float32),
        grid=(n, n_chunks),
        in_specs=in_specs,
        out_specs=pl.BlockSpec((1, c_chunk, s_out), lambda i, j: (i, j, 0)),
        compiler_params=pltpu.CompilerParams(
            dimension_semantics=("parallel", "parallel")),
    )(*args)

    if fuse:
        # NCHW-flat conv output -> capsules is a pure (free) reshape.
        return conv.reshape(n, num_caps, dim_caps)
    caps2d = conv.reshape(n * num_caps, dim_caps)
    return _squash(caps2d).reshape(n, num_caps, dim_caps)


# ---------------------------------------------------------------------------
# Reference (plain JAX) for the sanity check
# ---------------------------------------------------------------------------
def _reference(x, weight, bias, dim_caps, stride=1, padding=0):
    out = jax.lax.conv_general_dilated(
        x, weight, window_strides=(stride, stride),
        padding=[(padding, padding), (padding, padding)],
        dimension_numbers=("NCHW", "OIHW", "NCHW"),
        precision=jax.lax.Precision.HIGHEST)
    out = out + bias.reshape(1, -1, 1, 1)
    caps = out.reshape(x.shape[0], -1, dim_caps)
    norm = jnp.linalg.norm(caps, axis=-1, keepdims=True)
    scale = norm ** 2 / (1 + norm ** 2) / (norm + 1e-08)
    return scale * caps


if __name__ == "__main__":
    # Module config (small, consistent with PrimaryCapsule defaults)
    in_channels, out_channels = 4, 8
    dim_caps, kernel_size = 8, 3
    stride, padding = 1, 0

    key = jax.random.PRNGKey(0)
    kx, kw, kb = jax.random.split(key, 3)

    fan_in = in_channels * 1 * kernel_size
    bound = 1.0 / (fan_in ** 0.5)
    weight = jax.random.uniform(kw, (out_channels, in_channels, 1, kernel_size),
                                jnp.float32, -bound, bound)
    bias = jax.random.uniform(kb, (out_channels,), jnp.float32, -bound, bound)

    x = jax.random.normal(kx, (2, in_channels, 16, 16), jnp.float32)

    out = primary_capsule_forward(x, weight, bias,
                                  dim_caps=dim_caps, kernel_size=kernel_size,
                                  stride=stride, padding=padding)
    out = jax.block_until_ready(out)

    ref = _reference(x, weight, bias, dim_caps, stride, padding)
    assert out.shape == ref.shape, (out.shape, ref.shape)
    max_err = float(jnp.max(jnp.abs(out - ref)))
    assert jnp.allclose(out, ref, atol=1e-5, rtol=1e-5), max_err

    print("KERNEL_OK")
</pallas_src>

<mosaic_0001>
module attributes {stable_mosaic.version = 11 : i64} {
  func.func @_conv_caps_kernel(%arg0: i32, %arg1: i32, %arg2: memref<1x4x256xf32, #tpu.memory_space<vmem>>, %arg3: memref<8x12xf32, #tpu.memory_space<vmem>>, %arg4: memref<8x1xf32, #tpu.memory_space<vmem>>, %arg5: memref<254x254xf32, #tpu.memory_space<vmem>>, %arg6: memref<1x8x224xf32, #tpu.memory_space<vmem>>) attributes {dimension_semantics = [#tpu.dimension_semantics<parallel>, #tpu.dimension_semantics<parallel>], iteration_bounds = array<i64: 2, 1>, scalar_prefetch = 0 : i64, scratch_operands = 0 : i64, tpu.core_type = #tpu.core_type<tc>, window_params = [{transform_indices = @transform_0, window_bounds = array<i64: 1, 4, 256>}, {transform_indices = @transform_1, window_bounds = array<i64: 8, 12>}, {transform_indices = @transform_2, window_bounds = array<i64: 8, 1>}, {pipeline_mode = #tpu.pipeline_mode<synchronous>, transform_indices = @transform_3, window_bounds = array<i64: 254, 254>}, {transform_indices = @transform_4, window_bounds = array<i64: 1, 8, 224>}]} {
    %c0 = arith.constant 0 : index
    %c0_0 = arith.constant 0 : index
    %c0_1 = arith.constant 0 : index
    %0 = vector.load %arg2[%c0, %c0_0, %c0_1] : memref<1x4x256xf32, #tpu.memory_space<vmem>>, vector<1x4x256xf32>
    %1 = vector.shape_cast %0 : vector<1x4x256xf32> to vector<4x256xf32>
    %c0_2 = arith.constant 0 : index
    %c0_3 = arith.constant 0 : index
    %2 = vector.load %arg3[%c0_2, %c0_3] : memref<8x12xf32, #tpu.memory_space<vmem>>, vector<8x4xf32>
    %3 = vector.extract_strided_slice %1 {offsets = [0, 0], sizes = [4, 254], strides = [1, 1]} : vector<4x256xf32> to vector<4x254xf32>
    %cst = arith.constant dense<0.000000e+00> : vector<8x254xf32>
    %4 = tpu.matmul %2, %3, %cst {dimension_numbers = #tpu.dot_dimension_numbers<[1], [0], [0], [1], [0, 0, 1, 1], [], []>} : vector<8x4xf32>, vector<4x254xf32>, vector<8x254xf32> -> vector<8x254xf32>
    %c0_4 = arith.constant 0 : index
    %c4 = arith.constant 4 : index
    %5 = vector.load %arg3[%c0_4, %c4] : memref<8x12xf32, #tpu.memory_space<vmem>>, vector<8x4xf32>
    %6 = vector.extract_strided_slice %1 {offsets = [0, 1], sizes = [4, 254], strides = [1, 1]} : vector<4x256xf32> to vector<4x254xf32>
    %cst_5 = arith.constant dense<0.000000e+00> : vector<8x254xf32>
    %7 = tpu.matmul %5, %6, %cst_5 {dimension_numbers = #tpu.dot_dimension_numbers<[1], [0], [0], [1], [0, 0, 1, 1], [], []>} : vector<8x4xf32>, vector<4x254xf32>, vector<8x254xf32> -> vector<8x254xf32>
    %8 = arith.addf %4, %7 : vector<8x254xf32>
    %c0_6 = arith.constant 0 : index
    %c8 = arith.constant 8 : index
    %9 = vector.load %arg3[%c0_6, %c8] : memref<8x12xf32, #tpu.memory_space<vmem>>, vector<8x4xf32>
    %10 = vector.extract_strided_slice %1 {offsets = [0, 2], sizes = [4, 254], strides = [1, 1]} : vector<4x256xf32> to vector<4x254xf32>
    %cst_7 = arith.constant dense<0.000000e+00> : vector<8x254xf32>
    %11 = tpu.matmul %9, %10, %cst_7 {dimension_numbers = #tpu.dot_dimension_numbers<[1], [0], [0], [1], [0, 0, 1, 1], [], []>} : vector<8x4xf32>, vector<4x254xf32>, vector<8x254xf32> -> vector<8x254xf32>
    %12 = arith.addf %8, %11 : vector<8x254xf32>
    %c0_8 = arith.constant 0 : index
    %c0_9 = arith.constant 0 : index
    %13 = vector.load %arg4[%c0_8, %c0_9] : memref<8x1xf32, #tpu.memory_space<vmem>>, vector<8x1xf32>
    %14 = vector.broadcast %13 : vector<8x1xf32> to vector<8x254xf32>
    %15 = arith.addf %12, %14 : vector<8x254xf32>
    %16 = arith.mulf %15, %15 : vector<8x254xf32>
    %c0_10 = arith.constant 0 : index
    %c0_11 = arith.constant 0 : index
    %17 = vector.load %arg5[%c0_10, %c0_11] : memref<254x254xf32, #tpu.memory_space<vmem>>, vector<254x254xf32>
    %cst_12 = arith.constant dense<0.000000e+00> : vector<8x254xf32>
    %18 = tpu.matmul %16, %17, %cst_12 {dimension_numbers = #tpu.dot_dimension_numbers<[1], [0], [0], [1], [0, 0, 1, 1], [], []>} : vector<8x254xf32>, vector<254x254xf32>, vector<8x254xf32> -> vector<8x254xf32>
    %cst_13 = arith.constant 1.000000e+00 : f32
    %19 = vector.broadcast %cst_13 : f32 to vector<8x254xf32>
    %20 = arith.addf %19, %18 : vector<8x254xf32>
    %21 = math.sqrt %18 : vector<8x254xf32>
    %cst_14 = arith.constant 9.99999993E-9 : f32
    %22 = vector.broadcast %cst_14 : f32 to vector<8x254xf32>
    %23 = arith.addf %21, %22 : vector<8x254xf32>
    %24 = arith.mulf %20, %23 : vector<8x254xf32>
    %25 = arith.divf %18, %24 : vector<8x254xf32>
    %26 = arith.mulf %15, %25 : vector<8x254xf32>
    %27 = vector.extract_strided_slice %26 {offsets = [0, 0], sizes = [8, 14], strides = [1, 1]} : vector<8x254xf32> to vector<8x14xf32>
    %c0_15 = arith.constant 0 : index
    %c0_16 = arith.constant 0 : index
    %c0_17 = arith.constant 0 : index
    %28 = vector.load %arg6[%c0_15, %c0_16, %c0_17] : memref<1x8x224xf32, #tpu.memory_space<vmem>>, vector<1x8x14xf32>
    %29 = vector.shape_cast %28 : vector<1x8x14xf32> to vector<8x14xf32>
    %30 = vector.shape_cast %27 : vector<8x14xf32> to vector<1x8x14xf32>
    tpu.vector_store %arg6[%c0_15, %c0_16, %c0_17], %30 {strides = array<i32>} : memref<1x8x224xf32, #tpu.memory_space<vmem>>, vector<1x8x14xf32>,
    %31 = vector.extract_strided_slice %26 {offsets = [0, 16], sizes = [8, 14], strides = [1, 1]} : vector<8x254xf32> to vector<8x14xf32>
    %c0_18 = arith.constant 0 : index
    %c0_19 = arith.constant 0 : index
    %c14 = arith.constant 14 : index
    %32 = vector.load %arg6[%c0_18, %c0_19, %c14] : memref<1x8x224xf32, #tpu.memory_space<vmem>>, vector<1x8x14xf32>
    %33 = vector.shape_cast %32 : vector<1x8x14xf32> to vector<8x14xf32>
    %34 = vector.shape_cast %31 : vector<8x14xf32> to vector<1x8x14xf32>
    tpu.vector_store %arg6[%c0_18, %c0_19, %c14], %34 {strides = array<i32>} : memref<1x8x224xf32, #tpu.memory_space<vmem>>, vector<1x8x14xf32>,
    %35 = vector.extract_strided_slice %26 {offsets = [0, 32], sizes = [8, 14], strides = [1, 1]} : vector<8x254xf32> to vector<8x14xf32>
    %c0_20 = arith.constant 0 : index
    %c0_21 = arith.constant 0 : index
    %c28 = arith.constant 28 : index
    %36 = vector.load %arg6[%c0_20, %c0_21, %c28] : memref<1x8x224xf32, #tpu.memory_space<vmem>>, vector<1x8x14xf32>
    %37 = vector.shape_cast %36 : vector<1x8x14xf32> to vector<8x14xf32>
    %38 = vector.shape_cast %35 : vector<8x14xf32> to vector<1x8x14xf32>
    tpu.vector_store %arg6[%c0_20, %c0_21, %c28], %38 {strides = array<i32>} : memref<1x8x224xf32, #tpu.memory_space<vmem>>, vector<1x8x14xf32>,
    %39 = vector.extract_strided_slice %26 {offsets = [0, 48], sizes = [8, 14], strides = [1, 1]} : vector<8x254xf32> to vector<8x14xf32>
    %c0_22 = arith.constant 0 : index
    %c0_23 = arith.constant 0 : index
    %c42 = arith.constant 42 : index
    %40 = vector.load %arg6[%c0_22, %c0_23, %c42] : memref<1x8x224xf32, #tpu.memory_space<vmem>>, vector<1x8x14xf32>
    %41 = vector.shape_cast %40 : vector<1x8x14xf32> to vector<8x14xf32>
    %42 = vector.shape_cast %39 : vector<8x14xf32> to vector<1x8x14xf32>
    tpu.vector_store %arg6[%c0_22, %c0_23, %c42], %42 {strides = array<i32>} : memref<1x8x224xf32, #tpu.memory_space<vmem>>, vector<1x8x14xf32>,
    %43 = vector.extract_strided_slice %26 {offsets = [0, 64], sizes = [8, 14], strides = [1, 1]} : vector<8x254xf32> to vector<8x14xf32>
    %c0_24 = arith.constant 0 : index
    %c0_25 = arith.constant 0 : index
    %c56 = arith.constant 56 : index
    %44 = vector.load %arg6[%c0_24, %c0_25, %c56] : memref<1x8x224xf32, #tpu.memory_space<vmem>>, vector<1x8x14xf32>
    %45 = vector.shape_cast %44 : vector<1x8x14xf32> to vector<8x14xf32>
    %46 = vector.shape_cast %43 : vector<8x14xf32> to vector<1x8x14xf32>
    tpu.vector_store %arg6[%c0_24, %c0_25, %c56], %46 {strides = array<i32>} : memref<1x8x224xf32, #tpu.memory_space<vmem>>, vector<1x8x14xf32>,
    %47 = vector.extract_strided_slice %26 {offsets = [0, 80], sizes = [8, 14], strides = [1, 1]} : vector<8x254xf32> to vector<8x14xf32>
    %c0_26 = arith.constant 0 : index
    %c0_27 = arith.constant 0 : index
    %c70 = arith.constant 70 : index
    %48 = vector.load %arg6[%c0_26, %c0_27, %c70] : memref<1x8x224xf32, #tpu.memory_space<vmem>>, vector<1x8x14xf32>
    %49 = vector.shape_cast %48 : vector<1x8x14xf32> to vector<8x14xf32>
    %50 = vector.shape_cast %47 : vector<8x14xf32> to vector<1x8x14xf32>
    tpu.vector_store %arg6[%c0_26, %c0_27, %c70], %50 {strides = array<i32>} : memref<1x8x224xf32, #tpu.memory_space<vmem>>, vector<1x8x14xf32>,
    %51 = vector.extract_strided_slice %26 {offsets = [0, 96], sizes = [8, 14], strides = [1, 1]} : vector<8x254xf32> to vector<8x14xf32>
    %c0_28 = arith.constant 0 : index
    %c0_29 = arith.constant 0 : index
    %c84 = arith.constant 84 : index
    %52 = vector.load %arg6[%c0_28, %c0_29, %c84] : memref<1x8x224xf32, #tpu.memory_space<vmem>>, vector<1x8x14xf32>
    %53 = vector.shape_cast %52 : vector<1x8x14xf32> to vector<8x14xf32>
    %54 = vector.shape_cast %51 : vector<8x14xf32> to vector<1x8x14xf32>
    tpu.vector_store %arg6[%c0_28, %c0_29, %c84], %54 {strides = array<i32>} : memref<1x8x224xf32, #tpu.memory_space<vmem>>, vector<1x8x14xf32>,
    %55 = vector.extract_strided_slice %26 {offsets = [0, 112], sizes = [8, 14], strides = [1, 1]} : vector<8x254xf32> to vector<8x14xf32>
    %c0_30 = arith.constant 0 : index
    %c0_31 = arith.constant 0 : index
    %c98 = arith.constant 98 : index
    %56 = vector.load %arg6[%c0_30, %c0_31, %c98] : memref<1x8x224xf32, #tpu.memory_space<vmem>>, vector<1x8x14xf32>
    %57 = vector.shape_cast %56 : vector<1x8x14xf32> to vector<8x14xf32>
    %58 = vector.shape_cast %55 : vector<8x14xf32> to vector<1x8x14xf32>
    tpu.vector_store %arg6[%c0_30, %c0_31, %c98], %58 {strides = array<i32>} : memref<1x8x224xf32, #tpu.memory_space<vmem>>, vector<1x8x14xf32>,
    %59 = vector.extract_strided_slice %26 {offsets = [0, 128], sizes = [8, 14], strides = [1, 1]} : vector<8x254xf32> to vector<8x14xf32>
    %c0_32 = arith.constant 0 : index
    %c0_33 = arith.constant 0 : index
    %c112 = arith.constant 112 : index
    %60 = vector.load %arg6[%c0_32, %c0_33, %c112] : memref<1x8x224xf32, #tpu.memory_space<vmem>>, vector<1x8x14xf32>
    %61 = vector.shape_cast %60 : vector<1x8x14xf32> to vector<8x14xf32>
    %62 = vector.shape_cast %59 : vector<8x14xf32> to vector<1x8x14xf32>
    tpu.vector_store %arg6[%c0_32, %c0_33, %c112], %62 {strides = array<i32>} : memref<1x8x224xf32, #tpu.memory_space<vmem>>, vector<1x8x14xf32>,
    %63 = vector.extract_strided_slice %26 {offsets = [0, 144], sizes = [8, 14], strides = [1, 1]} : vector<8x254xf32> to vector<8x14xf32>
    %c0_34 = arith.constant 0 : index
    %c0_35 = arith.constant 0 : index
    %c126 = arith.constant 126 : index
    %64 = vector.load %arg6[%c0_34, %c0_35, %c126] : memref<1x8x224xf32, #tpu.memory_space<vmem>>, vector<1x8x14xf32>
    %65 = vector.shape_cast %64 : vector<1x8x14xf32> to vector<8x14xf32>
    %66 = vector.shape_cast %63 : vector<8x14xf32> to vector<1x8x14xf32>
    tpu.vector_store %arg6[%c0_34, %c0_35, %c126], %66 {strides = array<i32>} : memref<1x8x224xf32, #tpu.memory_space<vmem>>, vector<1x8x14xf32>,
    %67 = vector.extract_strided_slice %26 {offsets = [0, 160], sizes = [8, 14], strides = [1, 1]} : vector<8x254xf32> to vector<8x14xf32>
    %c0_36 = arith.constant 0 : index
    %c0_37 = arith.constant 0 : index
    %c140 = arith.constant 140 : index
    %68 = vector.load %arg6[%c0_36, %c0_37, %c140] : memref<1x8x224xf32, #tpu.memory_space<vmem>>, vector<1x8x14xf32>
    %69 = vector.shape_cast %68 : vector<1x8x14xf32> to vector<8x14xf32>
    %70 = vector.shape_cast %67 : vector<8x14xf32> to vector<1x8x14xf32>
    tpu.vector_store %arg6[%c0_36, %c0_37, %c140], %70 {strides = array<i32>} : memref<1x8x224xf32, #tpu.memory_space<vmem>>, vector<1x8x14xf32>,
    %71 = vector.extract_strided_slice %26 {offsets = [0, 176], sizes = [8, 14], strides = [1, 1]} : vector<8x254xf32> to vector<8x14xf32>
    %c0_38 = arith.constant 0 : index
    %c0_39 = arith.constant 0 : index
    %c154 = arith.constant 154 : index
    %72 = vector.load %arg6[%c0_38, %c0_39, %c154] : memref<1x8x224xf32, #tpu.memory_space<vmem>>, vector<1x8x14xf32>
    %73 = vector.shape_cast %72 : vector<1x8x14xf32> to vector<8x14xf32>
    %74 = vector.shape_cast %71 : vector<8x14xf32> to vector<1x8x14xf32>
    tpu.vector_store %arg6[%c0_38, %c0_39, %c154], %74 {strides = array<i32>} : memref<1x8x224xf32, #tpu.memory_space<vmem>>, vector<1x8x14xf32>,
    %75 = vector.extract_strided_slice %26 {offsets = [0, 192], sizes = [8, 14], strides = [1, 1]} : vector<8x254xf32> to vector<8x14xf32>
    %c0_40 = arith.constant 0 : index
    %c0_41 = arith.constant 0 : index
    %c168 = arith.constant 168 : index
    %76 = vector.load %arg6[%c0_40, %c0_41, %c168] : memref<1x8x224xf32, #tpu.memory_space<vmem>>, vector<1x8x14xf32>
    %77 = vector.shape_cast %76 : vector<1x8x14xf32> to vector<8x14xf32>
    %78 = vector.shape_cast %75 : vector<8x14xf32> to vector<1x8x14xf32>
    tpu.vector_store %arg6[%c0_40, %c0_41, %c168], %78 {strides = array<i32>} : memref<1x8x224xf32, #tpu.memory_space<vmem>>, vector<1x8x14xf32>,
    %79 = vector.extract_strided_slice %26 {offsets = [0, 208], sizes = [8, 14], strides = [1, 1]} : vector<8x254xf32> to vector<8x14xf32>
    %c0_42 = arith.constant 0 : index
    %c0_43 = arith.constant 0 : index
    %c182 = arith.constant 182 : index
    %80 = vector.load %arg6[%c0_42, %c0_43, %c182] : memref<1x8x224xf32, #tpu.memory_space<vmem>>, vector<1x8x14xf32>
    %81 = vector.shape_cast %80 : vector<1x8x14xf32> to vector<8x14xf32>
    %82 = vector.shape_cast %79 : vector<8x14xf32> to vector<1x8x14xf32>
    tpu.vector_store %arg6[%c0_42, %c0_43, %c182], %82 {strides = array<i32>} : memref<1x8x224xf32, #tpu.memory_space<vmem>>, vector<1x8x14xf32>,
    %83 = vector.extract_strided_slice %26 {offsets = [0, 224], sizes = [8, 14], strides = [1, 1]} : vector<8x254xf32> to vector<8x14xf32>
    %c0_44 = arith.constant 0 : index
    %c0_45 = arith.constant 0 : index
    %c196 = arith.constant 196 : index
    %84 = vector.load %arg6[%c0_44, %c0_45, %c196] : memref<1x8x224xf32, #tpu.memory_space<vmem>>, vector<1x8x14xf32>
    %85 = vector.shape_cast %84 : vector<1x8x14xf32> to vector<8x14xf32>
    %86 = vector.shape_cast %83 : vector<8x14xf32> to vector<1x8x14xf32>
    tpu.vector_store %arg6[%c0_44, %c0_45, %c196], %86 {strides = array<i32>} : memref<1x8x224xf32, #tpu.memory_space<vmem>>, vector<1x8x14xf32>,
    %87 = vector.extract_strided_slice %26 {offsets = [0, 240], sizes = [8, 14], strides = [1, 1]} : vector<8x254xf32> to vector<8x14xf32>
    %c0_46 = arith.constant 0 : index
    %c0_47 = arith.constant 0 : index
    %c210 = arith.constant 210 : index
    %88 = vector.load %arg6[%c0_46, %c0_47, %c210] : memref<1x8x224xf32, #tpu.memory_space<vmem>>, vector<1x8x14xf32>
    %89 = vector.shape_cast %88 : vector<1x8x14xf32> to vector<8x14xf32>
    %90 = vector.shape_cast %87 : vector<8x14xf32> to vector<1x8x14xf32>
    tpu.vector_store %arg6[%c0_46, %c0_47, %c210], %90 {strides = array<i32>} : memref<1x8x224xf32, #tpu.memory_space<vmem>>, vector<1x8x14xf32>,
    return
  }
  func.func @transform_0(%arg0: i32, %arg1: i32) -> (i32, i32, i32) {
    %c0_i32 = arith.constant 0 : i32
    %c0_i32_0 = arith.constant 0 : i32
    %c0_i32_1 = arith.constant 0 : i32
    return %arg0, %c0_i32, %c0_i32_0 : i32, i32, i32
  }
  func.func @transform_1(%arg0: i32, %arg1: i32) -> (i32, i32) {
    %c0_i32 = arith.constant 0 : i32
    %c0_i32_0 = arith.constant 0 : i32
    return %arg1, %c0_i32 : i32, i32
  }
  func.func @transform_2(%arg0: i32, %arg1: i32) -> (i32, i32) {
    %c0_i32 = arith.constant 0 : i32
    %c0_i32_0 = arith.constant 0 : i32
    return %arg1, %c0_i32 : i32, i32
  }
  func.func @transform_3(%arg0: i32, %arg1: i32) -> (i32, i32) {
    %c0_i32 = arith.constant 0 : i32
    %c0_i32_0 = arith.constant 0 : i32
    %c0_i32_1 = arith.constant 0 : i32
    return %c0_i32, %c0_i32_0 : i32, i32
  }
  func.func @transform_4(%arg0: i32, %arg1: i32) -> (i32, i32, i32) {
    %c0_i32 = arith.constant 0 : i32
    %c0_i32_0 = arith.constant 0 : i32
    return %arg0, %arg1, %c0_i32 : i32, i32, i32
  }
}

</mosaic_0001>

<bundles_post_ra>
// kernel: primary_capsule_forward.1
= control target key start
LH: loop header
LB: loop body
LE: loop exit
PB: predicated region body
PF: predicated region fallthrough
CT: control target
= control target key end

     0   :  { %s1106_s15 = smov 0   ;;  %s1108_s16 = smov 0   ;;  %s1398_s0 = inlined_call_operand.vmem [shape: f32[2,4,256], index: 0, kind: input, shape index: {}]   ;;  %s1399_s1 = inlined_call_operand.vmem [shape: f32[8,12], index: 1, kind: input, shape index: {}]   ;;  %s1400_s2 = inlined_call_operand.vmem [shape: f32[8,1], index: 2, kind: input, shape index: {}]   ;;  %s1401_s3 = inlined_call_operand.vmem [shape: f32[254,254], index: 3, kind: input, shape index: {}]   ;;  %s1402_s4 = inlined_call_operand.vmem [shape: f32[2,8,224], index: 4, kind: output, shape index: {}]  }
   0x1   :  { %s1110_s17 = smov 0  }
   0x2 LB: > { %s26_s18 = sadd.s32 1, %s1056_s16  ;;  %p894_p0 = scmp.ge.s32.totalorder %s1060_s17, 1  ;;  %s1060_s17 = sphi %s1110_s17, %s14_s17   ;;  %s1056_s16 = sphi %s1108_s16, %s1404_s16   ;;  %s1052_s15 = sphi %s1106_s15, %s1403_s15  }
   0x3   : > { %p28_p1 = scmp.ge.s32.totalorder %s26_s18, 2  ;;  %p194_p2 = scmp.lt.s32.totalorder %s1060_s17, 3 }
   0x5   : > { %s1406_s18 = smov (%p28_p1, %s26_s18), 0  ;;  %p195_p3 = pnand %p894_p0, %p194_p2 }
   0x6   : > { %p232_p4 = scmp.lt.s32.totalorder (!%p195_p3), %s1052_s15, 1  ;;  %v1127_v0 = vld [vmem:[%s1399_s1] sm:$0xff] (!%p195_p3)  ;;  %v1062_v1 = vmov (!%p195_p3), 0.0   ;;  %s1063_s21 = smov (!%p195_p3), 124   ;;  %v523_v5 = vld [vmem:[%s1401_s3 + $0x8] sm:$0xff] (!%p195_p3)  ;;  %v525_v6 = vld [vmem:[%s1401_s3 + $0x18] sm:$0xff] (!%p195_p3) }
   0x7   : > { %198 = sbr.rel (%p195_p3) target bundleno = 764 (0x2fc), region = 36  ;;  %339 = vmatprep.mubr.f32.mxu0 (!%p195_p3), %v1062_v1  ;;  %257 = vrot.lane.b32.xlu1 (!%p195_p3), %v1127_v0, %s1063_s21  ;;  %s1064_s26 = smov (!%p195_p3), 127   ;;  %v512_v4 = vld [vmem:[%s1400_s2] sm:$0xff] (!%p195_p3)  ;;  %v1067_v7 = vmov (!%p195_p3), 0   ;;  %v915_v8 = vpack.c.bf16 (!%p195_p3), %v525_v6, %v523_v5  ;;  %v524_v10 = vld [vmem:[%s1401_s3 + $0x10] sm:$0xff] (!%p195_p3)  ;;  %v527_v11 = vld [vmem:[%s1401_s3 + $0x28] sm:$0xff] (!%p195_p3) }
   0x8   : > { %s1065_s27 = smov (!%p195_p3), 126   ;;  %s1066_s28 = smov (!%p195_p3), 120   ;;  %1028 = vset.pattern.permute.xlu0 (!%p195_p3), %v1067_v7  ;;  %v522_v9 = vld [vmem:[%s1401_s3] sm:$0xff] (!%p195_p3)  ;;  %v529_v13 = vld [vmem:[%s1401_s3 + $0x38] sm:$0xff] (!%p195_p3)  ;;  %v528_v15 = vld [vmem:[%s1401_s3 + $0x30] sm:$0xff] (!%p195_p3)  ;;  %vm270_vm0 = vcmask (!%p195_p3), 1043456  }
   0x9   : > { %v917_v12 = vpack.c.bf16 (!%p195_p3), %v524_v10, %v522_v9  ;;  %v526_v14 = vld [vmem:[%s1401_s3 + $0x20] sm:$0xff] (!%p195_p3)  ;;  %916 = vmatprep.subr.bf16.mxu1 (!%p195_p3), %v915_v8  ;;  %v919_v16 = vpack.c.bf16 (!%p195_p3), %v529_v13, %v527_v11  ;;  %v531_v17 = vld [vmem:[%s1401_s3 + $0x48] sm:$0xff] (!%p195_p3)  ;;  %v533_v18 = vld [vmem:[%s1401_s3 + $0x58] sm:$0xff] (!%p195_p3)  ;;  %vm265_vm1 = vcmask (!%p195_p3), 1039360   ;;  %vm267_vm2 = vcmask (!%p195_p3), 31744   ;;  %s1069_s30 = smov (!%p195_p3), 122  }
   0xa   : > { %v921_v19 = vpack.c.bf16 (!%p195_p3), %v528_v15, %v526_v14  ;;  %v923_v20 = vpack.c.bf16 (!%p195_p3), %v533_v18, %v531_v17  ;;  %v530_v21 = vld [vmem:[%s1401_s3 + $0x40] sm:$0xff] (!%p195_p3)  ;;  %v532_v22 = vld [vmem:[%s1401_s3 + $0x50] sm:$0xff] (!%p195_p3)  ;;  %v535_v23 = vld [vmem:[%s1401_s3 + $0x68] sm:$0xff] (!%p195_p3)  ;;  %vm431_vm3 = vcmask (!%p195_p3), 1031168   ;;  %vm589_vm4 = vcmask (!%p195_p3), 1045504   ;;  %s1071_s5 = smov (!%p195_p3), 110  }
   0xb   : > { %918 = vmatpush1.bf16.msra.mxu1 (!%p195_p3), %v917_v12  ;;  %v537_v24 = vld [vmem:[%s1401_s3 + $0x78] sm:$0xff] (!%p195_p3)  ;;  %v925_v25 = vpack.c.bf16 (!%p195_p3), %v532_v22, %v530_v21  ;;  %v534_v27 = vld [vmem:[%s1401_s3 + $0x60] sm:$0xff] (!%p195_p3)  ;;  %v536_v28 = vld [vmem:[%s1401_s3 + $0x70] sm:$0xff] (!%p195_p3)  ;;  %vm1068_vm5 = vmmov (!%p195_p3), 1   ;;  %vm693_vm11 = vcmask (!%p195_p3), 113664   ;;  %s1072_s6 = smov (!%p195_p3), 116  }
   0xc   : > { %920 = vmatprep.subr.bf16.mxu1 (!%p195_p3), %v919_v16  ;;  %v927_v26 = vpack.c.bf16 (!%p195_p3), %v537_v24, %v535_v23  ;;  %v539_v29 = vld [vmem:[%s1401_s3 + $0x88] sm:$0xff] (!%p195_p3)  ;;  %v541_v30 = vld [vmem:[%s1401_s3 + $0x98] sm:$0xff] (!%p195_p3)  ;;  %v929_v31 = vpack.c.bf16 (!%p195_p3), %v536_v28, %v534_v27  ;;  %v538_v33 = vld [vmem:[%s1401_s3 + $0x80] sm:$0xff] (!%p195_p3)  ;;  %s1073_s7 = smov (!%p195_p3), 108   ;;  %s1074_s8 = smov (!%p195_p3), 114   ;;  %vm699_vm12 = vcmask (!%p195_p3), 228464  }
   0xd   : > { %v931_v32 = vpack.c.bf16 (!%p195_p3), %v541_v30, %v539_v29  ;;  %v540_v34 = vld [vmem:[%s1401_s3 + $0x90] sm:$0xff] (!%p195_p3)  ;;  %v543_v35 = vld [vmem:[%s1401_s3 + $0xa8] sm:$0xff] (!%p195_p3)  ;;  %v545_v36 = vld [vmem:[%s1401_s3 + $0xb8] sm:$0xff] (!%p195_p3)  ;;  %s1075_s9 = smov (!%p195_p3), 106   ;;  %s1077_s10 = smov (!%p195_p3), 104   ;;  %vm704_vm13 = vcmask (!%p195_p3), 343264  }
   0xe   : > { %s1408_s15 = smov (!%p232_p4, %s1052_s15), 1  ;;  %v933_v37 = vpack.c.bf16 %v540_v34, %v538_v33  ;;  %v935_v38 = vpack.c.bf16 %v545_v36, %v543_v35  ;;  %v542_v39 = vld [vmem:[%s1401_s3 + $0xa0] sm:$0xff]  ;;  %v544_v40 = vld [vmem:[%s1401_s3 + $0xb0] sm:$0xff]  ;;  %v547_v41 = vld [vmem:[%s1401_s3 + $0xc8] sm:$0xff]  ;;  %s1080_s11 = smov 100   ;;  %vm709_vm14 = vcmask 458064  }
   0xf   : > { %s913_s22 = sshll.u32 %s1408_s15, 3  ;;  %922 = vmatpush1.bf16.msra.mxu1 %v921_v19  ;;  %v549_v42 = vld [vmem:[%s1401_s3 + $0xd8] sm:$0xff]  ;;  %v937_v43 = vpack.c.bf16 %v544_v40, %v542_v39  ;;  %v546_v45 = vld [vmem:[%s1401_s3 + $0xc0] sm:$0xff]  ;;  %v548_v46 = vld [vmem:[%s1401_s3 + $0xd0] sm:$0xff]  ;;  %s914_s24 = sshll.u32 %s1408_s15, 4  ;;  %vm714_vm15 = vcmask 572864  }
  0x10   : > { %s236_s25 = scalar_lea.vmem %s1398_s0, %s913_s22  ;;  %924 = vmatprep.subr.bf16.mxu1 %v923_v20  ;;  %v939_v44 = vpack.c.bf16 %v549_v42, %v547_v41  ;;  %v551_v47 = vld [vmem:[%s1401_s3 + $0xe8] sm:$0xff]  ;;  %v553_v48 = vld [vmem:[%s1401_s3 + $0xf8] sm:$0xff]  ;;  %v941_v49 = vpack.c.bf16 %v548_v46, %v546_v45  ;;  %v550_v51 = vld [vmem:[%s1401_s3 + $0xe0] sm:$0xff]  ;;  %s1367_s29 = scalar_lea.vmem %s1402_s4, %s914_s24 }
  0x11   : > { %v1138_v2 = vld [vmem:[%s236_s25] sm:$0xff]  ;;  %v943_v50 = vpack.c.bf16 %v553_v48, %v551_v47  ;;  %v552_v52 = vld [vmem:[%s1401_s3 + $0xf0] sm:$0xff]  ;;  %v555_v53 = vld [vmem:[%s1401_s3 + $0x108] sm:$0xff]  ;;  %s1070_s15 = smov 118  }
  0x12   : > { %261 = vrot.lane.b32.xlu0 %v1138_v2, %s1064_s26  ;;  %v1143_v3 = vcombine.high %v1138_v2, %v1138_v2  ;;  %427 = vrot.lane.b32.xlu1 %v1138_v2, %s1065_s27  ;;  %v557_v54 = vld [vmem:[%s1401_s3 + $0x118] sm:$0xff]  ;;  %v945_v55 = vpack.c.bf16 %v552_v52, %v550_v51  ;;  %v554_v57 = vld [vmem:[%s1401_s3 + $0x100] sm:$0xff]  ;;  %vm976_vm6 = vmpackc.low %vm589_vm4, %vm1068_vm5  ;;  %vm729_vm4 = vcmask 917264   ;;  %vm752_vm5 = vcmask 326864  }
  0x13   : > { %926 = vmatpush1.bf16.msra.mxu1 %v925_v25  ;;  %v947_v56 = vpack.c.bf16 %v557_v54, %v555_v53  ;;  %v556_v58 = vld [vmem:[%s1401_s3 + $0x110] sm:$0xff]  ;;  %v559_v59 = vld [vmem:[%s1401_s3 + $0x128] sm:$0xff]  ;;  %v561_v60 = vld [vmem:[%s1401_s3 + $0x138] sm:$0xff] }
  0x14   : > { %928 = vmatprep.subr.bf16.mxu1 %v927_v26  ;;  %v949_v61 = vpack.c.bf16 %v556_v58, %v554_v57  ;;  %v951_v62 = vpack.c.bf16 %v561_v60, %v559_v59  ;;  %v558_v63 = vld [vmem:[%s1401_s3 + $0x120] sm:$0xff]  ;;  %v563_v5 = vld [vmem:[%s1401_s3 + $0x148] sm:$0xff]  ;;  %v565_v6 = vld [vmem:[%s1401_s3 + $0x158] sm:$0xff] }
  0x15   : > { %v955_v8 = vpack.c.bf16 %v565_v6, %v563_v5  ;;  %v562_v9 = vld [vmem:[%s1401_s3 + $0x140] sm:$0xff]  ;;  %v564_v10 = vld [vmem:[%s1401_s3 + $0x150] sm:$0xff]  ;;  %v567_v11 = vld [vmem:[%s1401_s3 + $0x168] sm:$0xff] }
  0x16   : > { %263 = vrot.lane.b32.xlu0 %v1143_v3, %s1064_s26  ;;  %425 = vrot.lane.b32.xlu1 %v1127_v0, %s1066_s28  ;;  %v569_v12 = vld [vmem:[%s1401_s3 + $0x178] sm:$0xff]  ;;  %v957_v13 = vpack.c.bf16 %v564_v10, %v562_v9  ;;  %v566_v15 = vld [vmem:[%s1401_s3 + $0x160] sm:$0xff] }
  0x17   : > { %930 = vmatpush1.bf16.msra.mxu1 %v929_v31  ;;  %v959_v14 = vpack.c.bf16 %v569_v12, %v567_v11  ;;  %v568_v16 = vld [vmem:[%s1401_s3 + $0x170] sm:$0xff]  ;;  %v571_v17 = vld [vmem:[%s1401_s3 + $0x188] sm:$0xff]  ;;  %v573_v18 = vld [vmem:[%s1401_s3 + $0x198] sm:$0xff] }
  0x18   : > { %932 = vmatprep.subr.bf16.mxu1 %v931_v32  ;;  %v961_v19 = vpack.c.bf16 %v568_v16, %v566_v15  ;;  %v963_v20 = vpack.c.bf16 %v573_v18, %v571_v17  ;;  %v570_v21 = vld [vmem:[%s1401_s3 + $0x180] sm:$0xff]  ;;  %v572_v22 = vld [vmem:[%s1401_s3 + $0x190] sm:$0xff]  ;;  %v575_v23 = vld [vmem:[%s1401_s3 + $0x1a8] sm:$0xff] }
  0x19   : > { %v577_v24 = vld [vmem:[%s1401_s3 + $0x1b8] sm:$0xff]  ;;  %v965_v25 = vpack.c.bf16 %v572_v22, %v570_v21  ;;  %v574_v27 = vld [vmem:[%s1401_s3 + $0x1a0] sm:$0xff]  ;;  %v576_v28 = vld [vmem:[%s1401_s3 + $0x1b0] sm:$0xff] }
  0x1a   : > { %429 = vrot.lane.b32.xlu0 %v1143_v3, %s1065_s27  ;;  %v967_v26 = vpack.c.bf16 %v577_v24, %v575_v23  ;;  %v579_v29 = vld [vmem:[%s1401_s3 + $0x1c8] sm:$0xff]  ;;  %v581_v30 = vld [vmem:[%s1401_s3 + $0x1d8] sm:$0xff]  ;;  %v969_v31 = vpack.c.bf16 %v576_v28, %v574_v27  ;;  %v580_v40 = vld [vmem:[%s1401_s3 + $0x1d0] sm:$0xff] }
  0x1b   : > { %934 = vmatpush1.bf16.msra.mxu1 %v933_v37  ;;  %v971_v32 = vpack.c.bf16 %v581_v30, %v579_v29 }
  0x1c   : > { %936 = vmatprep.subr.bf16.mxu1 %v935_v38 }
  0x1e   : > { %515 = vperm.xlu0 %1028, %v512_v4   ;;  %v560_v4 = vld [vmem:[%s1401_s3 + $0x130] sm:$0xff] }
  0x1f   : > { %938 = vmatpush1.bf16.msra.mxu1 %v937_v43  ;;  %v953_v7 = vpack.c.bf16 %v560_v4, %v558_v63  ;;  %v582_v43 = vld [vmem:[%s1401_s3 + $0x1e0] sm:$0xff] }
  0x20   : > { %940 = vmatprep.subr.bf16.mxu1 %v939_v44  ;;  %v584_v44 = vld [vmem:[%s1401_s3 + $0x1f0] sm:$0x3f] }
  0x21   : > { %v978_v45 = vpack.c.bf16 %v584_v44, %v582_v43 }
  0x23   : > { %942 = vmatpush1.bf16.msra.mxu1 %v941_v49 }
  0x24   : > { %944 = vmatprep.subr.bf16.mxu1 %v943_v50 }
  0x27   : > { %946 = vmatpush1.bf16.msra.mxu1 %v945_v55 }
  0x28   : > { %948 = vmatprep.subr.bf16.mxu1 %v947_v56 }
  0x2b   : > { %950 = vmatpush1.bf16.msra.mxu1 %v949_v61 }
  0x2c   : > { %952 = vmatprep.subr.bf16.mxu1 %v951_v62 }
  0x2f   : > { %954 = vmatpush1.bf16.msra.mxu1 %v953_v7 }
  0x30   : > { %956 = vmatprep.subr.bf16.mxu1 %v955_v8 }
  0x33   : > { %958 = vmatpush1.bf16.msra.mxu1 %v957_v13 }
  0x34   : > { %960 = vmatprep.subr.bf16.mxu1 %v959_v14 }
  0x37   : > { %962 = vmatpush1.bf16.msra.mxu1 %v961_v19 }
  0x38   : > { %964 = vmatprep.subr.bf16.mxu1 %v963_v20 }
  0x3b   : > { %966 = vmatpush1.bf16.msra.mxu1 %v965_v25 }
  0x3c   : > { %968 = vmatprep.subr.bf16.mxu1 %v967_v26 }
  0x3f   : > { %970 = vmatpush1.bf16.msra.mxu1 %v969_v31 }
  0x40   : > { %972 = vmatprep.subr.bf16.mxu1 %v971_v32 }
  0x79   : > { %v258_v35 = vpop.permute.xlu1 %257 }
  0x84   : > { %v262_v33 = vpop.permute.xlu0 %261  ;;  %v428_v38 = vpop.permute.xlu1 %427 }
  0x88   : > { %v264_v34 = vpop.permute.xlu0 %263 }
  0x89   : > { %899 = vmatprep.subr.msk.mxu0 %vm270_vm0, %v264_v34  ;;  %v266_v36 = vsel %vm265_vm1, %v262_v33, %v264_v34  ;;  %vm742_vm1 = vcmask 97280  }
  0x8a   : > { %900 = vmatpush1.msk.msra.mxu0 %vm270_vm0, %v266_v36 }
  0x8b   : > { %901 = vmatmul.mubr.msk.f32.vlgmr.msra.gmra.mrb[0].mxu0 %vm267_vm2, %v258_v35  ;;  %902 = vmatprep.subr.msk.mxu0 %vm270_vm0, %v1143_v3  ;;  %v426_v3 = vpop.permute.xlu1 %425 }
  0x8c   : > { %903 = vmatpush1.msk.msra.mxu0 %vm270_vm0, %v1138_v2  ;;  %416 = vmatprep.mubr.f32.mxu0 %v1062_v1  ;;  %v430_v37 = vpop.permute.xlu0 %429  ;;  %v578_v2 = vld [vmem:[%s1401_s3 + $0x1c0] sm:$0xff] }
  0x8d   : > { %905 = vmatprep.subr.msk.mxu0 %vm270_vm0, %v430_v37  ;;  %v432_v39 = vsel %vm431_vm3, %v428_v38, %v430_v37  ;;  %v973_v41 = vpack.c.bf16 %v580_v40, %v578_v2 }
  0x8f   : > { %974 = vmatpush1.bf16.msra.mxu1 %v973_v41 }
  0x93   : > { %904 = vmatmul.mubr.msk.f32.vlgmr.msra.gmra.mrb[0].mxu0 %vm267_vm2, %v1127_v0  ;;  %v583_v0 = vld [vmem:[%s1401_s3 + $0x1e8] sm:$0xff] }
  0x94   : > { %906 = vmatpush1.msk.msra.mxu0 %vm270_vm0, %v432_v39  ;;  %503 = vmatprep.mubr.f32.mxu0 %v1062_v1  ;;  %v585_v1 = vld [vmem:[%s1401_s3 + $0x1f8] sm:$0x3f]  ;;  %vm719_vm0 = vcmask 687664  }
  0x95   : > { %v975_v42 = vpack.c.bf16 %v585_v1, %v583_v0 }
  0x97   : > { %977 = vmatprep.subr.msk.bf16.mxu1 %vm976_vm6, %v975_v42 }
  0x98   : > { %980 = vmatpush1.bf16.msk.msra.mxu1 %vm976_vm6, %v978_v45  ;;  %vm735_vm6 = vcmask 1032064  }
  0x9b   : > { %907 = vmatmul.mubr.msk.f32.vlgmr.msra.gmra.mrb[0].mxu0 %vm267_vm2, %v426_v3  ;;  %vm724_vm2 = vcmask 802464  }
  0x9d   : > { %v516_v46 = vpop.permute.xlu0 %515 }
 0x16e   : > { %v505_v47 = vpop.f32.mrb[0].mxu0 }
 0x16f   : > { %v518_v48 = vadd.f32 %v516_v46, %v505_v47  ;;  %v507_v49 = vpop.f32.mrb[1].mxu0 }
 0x170   : > { %v519_v50 = vadd.f32 %v516_v46, %v507_v49 }
 0x171   : > { %v520_v52 = vmul.f32 %v518_v48, %v518_v48 }
 0x172   : > { %v521_v51 = vmul.f32 %v519_v50, %v519_v50 }
 0x174   : > { %910 = vmatprep.mubr.msk.f32.mxu1 %vm431_vm3, %v521_v51  ;;  %vm747_vm3 = vcmask 212064  }
 0x175   : > { %661 = vmatmul.mubr.f32.vlgmr.msra.gmra.mrb[0].mxu1 %v520_v52 }
 0x248   : > { %v662_v53 = vpop.f32.mrb[0].mxu1 }
 0x249   : > { %1030 = vrsqrt.f32 %v662_v53  ;;  %v664_v54 = vpop.f32.mrb[1].mxu1  ;;  %vm671_vm7 = vcmp.eq.f32.partialorder %v662_v53, inf  ;;  %v674_v58 = vand.u32 2147483648, %v662_v53  ;;  %vm673_vm8 = vcmp.eq.f32.partialorder %v662_v53, 0.0 }
 0x24a   : > { %1032 = vrsqrt.f32 %v664_v54  ;;  %vm678_vm9 = vcmp.eq.f32.partialorder %v664_v54, inf  ;;  %v681_v61 = vand.u32 2147483648, %v664_v54  ;;  %vm680_vm10 = vcmp.eq.f32.partialorder %v664_v54, 0.0 }
 0x24b   : > { %v667_v4 = vadd.f32 1.0, %v662_v53  ;;  %v668_v9 = vadd.f32 1.0, %v664_v54 }
 0x253   : > { %v1031_v55 = vpop.eup %1030 }
 0x254   : > { %v1033_v56 = vpop.eup %1032  ;;  %v670_v57 = vmul.f32 %v1031_v55, %v662_v53 }
 0x255   : > { %v677_v59 = vmul.f32 %v1033_v56, %v664_v54 }
 0x256   : > { %v672_v60 = vsel %vm671_vm7, %v662_v53, %v670_v57  ;;  %vm757_vm7 = vcmask 441664  }
 0x257   : > { %v675_v62 = vsel %vm673_vm8, %v674_v58, %v672_v60  ;;  %v679_v63 = vsel %vm678_vm9, %v664_v54, %v677_v59  ;;  %vm740_vm8 = vcmask 1048560   ;;  %vm762_vm9 = vcmask 556464  }
 0x258   : > { %v683_v5 = vadd.f32 1e-08, %v675_v62  ;;  %v682_v6 = vsel %vm680_vm10, %v681_v61, %v679_v63  ;;  %vm767_vm10 = vcmask 671264  }
 0x259   : > { %v684_v7 = vadd.f32 1e-08, %v682_v6 }
 0x25a   : > { %v685_v8 = vmul.f32 %v683_v5, %v667_v4 }
 0x25b   : > { %v686_v10 = vmul.f32 %v684_v7, %v668_v9 }
 0x25c   : > { %1034 = vrcp.f32 %v685_v8 }
 0x25d   : > { %1036 = vrcp.f32 %v686_v10 }
 0x266   : > { %v1035_v11 = vpop.eup %1034 }
 0x267   : > { %v688_v12 = vmul.f32 %v1035_v11, %v662_v53  ;;  %v1037_v14 = vpop.eup %1036 }
 0x268   : > { %v690_v15 = vmul.f32 %v1037_v14, %v664_v54 }
 0x269   : > { %v691_v13 = vmul.f32 %v688_v12, %v518_v48 }
 0x26a   : > { %v692_v16 = vmul.f32 %v690_v15, %v519_v50 }
 0x26b   : > { %706 = vrot.lane.b32.xlu0 %v691_v13, %s1069_s30  ;;  %696 = vrot.lane.b32.xlu1 %v691_v13, %s1065_s27  ;;  %694 = vst.msk [vmem:[%s1367_s29] sm:$0xff] %vm693_vm11, %v691_v13  ;;  %s1076_s27 = smov 112   ;;  %vm772_vm11 = vcmask 786064  }
 0x26f   : > { %711 = vrot.lane.b32.xlu0 %v691_v13, %s1066_s28  ;;  %701 = vrot.lane.b32.xlu1 %v691_v13, %s1063_s21  ;;  %s1078_s21 = smov 98   ;;  %s1079_s28 = smov 102  }
 0x273   : > { %716 = vrot.lane.b32.xlu0 %v691_v13, %s1070_s15  ;;  %737 = vrot.lane.b32.xlu1 %v692_v16, %s1071_s5 }
 0x277   : > { %721 = vrot.lane.b32.xlu0 %v691_v13, %s1072_s6  ;;  %744 = vrot.lane.b32.xlu1 %v692_v16, %s1073_s7 }
 0x27b   : > { %726 = vrot.lane.b32.xlu0 %v691_v13, %s1074_s8  ;;  %749 = vrot.lane.b32.xlu1 %v692_v16, %s1075_s9 }
 0x27f   : > { %732 = vrot.lane.b32.xlu0 %v692_v16, %s1076_s27  ;;  %754 = vrot.lane.b32.xlu1 %v692_v16, %s1077_s10 }
 0x283   : > { %769 = vrot.lane.b32.xlu0 %v692_v16, %s1078_s21  ;;  %759 = vrot.lane.b32.xlu1 %v692_v16, %s1079_s28 }
 0x287   : > { %764 = vrot.lane.b32.xlu1 %v692_v16, %s1080_s11 }
 0x2dd   : > { %v707_v17 = vpop.permute.xlu0 %706  ;;  %v697_v18 = vpop.permute.xlu1 %696 }
 0x2de   : > { %700 = vst.msk [vmem:[%s1367_s29] sm:$0xff] %vm699_vm12, %v697_v18 }
 0x2e1   : > { %v712_v19 = vpop.permute.xlu0 %711  ;;  %v702_v20 = vpop.permute.xlu1 %701 }
 0x2e2   : > { %705 = vst.msk [vmem:[%s1367_s29] sm:$0xff] %vm704_vm13, %v702_v20 }
 0x2e3   : > { %710 = vst.msk [vmem:[%s1367_s29] sm:$0xff] %vm709_vm14, %v707_v17 }
 0x2e4   : > { %715 = vst.msk [vmem:[%s1367_s29] sm:$0xff] %vm714_vm15, %v712_v19 }
 0x2e5   : > { %v717_v21 = vpop.permute.xlu0 %716  ;;  %v738_v22 = vpop.permute.xlu1 %737 }
 0x2e6   : > { %720 = vst.msk [vmem:[%s1367_s29] sm:$0xff] %vm719_vm0, %v717_v21 }
 0x2e7   : > { %743 = vst.msk [vmem:[%s1367_s29 + $0x8] sm:$0xff] %vm742_vm1, %v738_v22 }
 0x2e9   : > { %v722_v23 = vpop.permute.xlu0 %721  ;;  %v745_v24 = vpop.permute.xlu1 %744 }
 0x2ea   : > { %725 = vst.msk [vmem:[%s1367_s29] sm:$0xff] %vm724_vm2, %v722_v23 }
 0x2eb   : > { %748 = vst.msk [vmem:[%s1367_s29 + $0x8] sm:$0xff] %vm747_vm3, %v745_v24 }
 0x2ed   : > { %v727_v25 = vpop.permute.xlu0 %726  ;;  %v750_v26 = vpop.permute.xlu1 %749 }
 0x2ee   : > { %730 = vst.msk [vmem:[%s1367_s29] sm:$0xff] %vm729_vm4, %v727_v25 }
 0x2ef   : > { %753 = vst.msk [vmem:[%s1367_s29 + $0x8] sm:$0xff] %vm752_vm5, %v750_v26 }
 0x2f1   : > { %v733_v27 = vpop.permute.xlu0 %732  ;;  %v755_v28 = vpop.permute.xlu1 %754 }
 0x2f2   : > { %736 = vst.msk [vmem:[%s1367_s29] sm:$0xff] %vm735_vm6, %v733_v27 }
 0x2f3   : > { %758 = vst.msk [vmem:[%s1367_s29 + $0x8] sm:$0xff] %vm757_vm7, %v755_v28 }
 0x2f4   : > { %741 = vst.msk [vmem:[%s1367_s29] sm:$0xff] %vm740_vm8, %v738_v22 }
 0x2f5   : > { %v760_v29 = vpop.permute.xlu1 %759  ;;  %v770_v31 = vpop.permute.xlu0 %769 }
 0x2f6   : > { %763 = vst.msk [vmem:[%s1367_s29 + $0x8] sm:$0xff] %vm762_vm9, %v760_v29 }
 0x2f9   : > { %v765_v30 = vpop.permute.xlu1 %764 }
 0x2fa   : > { %768 = vst.msk [vmem:[%s1367_s29 + $0x8] sm:$0xff] %vm767_vm10, %v765_v30 }
 0x2fb   : > { %773 = vst.msk [vmem:[%s1367_s29 + $0x8] sm:$0xff] %vm772_vm11, %v770_v31 }
 0x2fc PF: > { %s14_s17 = sadd.s32 1, %s1060_s17   ;;  %s1403_s15 = smov %s1056_s16 }
 0x2fd   : > { %p11_p5 = scmp.ge.s32.totalorder %s14_s17, 4   ;;  %s1404_s16 = smov %s1406_s18 }
 0x2ff   :  { %13 = sbr.rel (!%p11_p5) target bundleno = 2 (0x2), region = 72 }

</bundles_post_ra>
